<compile_context>
chip_gen: v6e
topology: v6e:2x2x1
jax: 0.10.0
libtpu: 0.0.40
codegen_flags: <defaults>
</compile_context>

<pallas_src>
import math

import jax
import jax.numpy as jnp
from jax.experimental import pallas as pl
from jax.experimental.pallas import tpu as pltpu


def _cdiv(a, b):
    return -(-a // b)


def _round_up(x, m):
    return _cdiv(x, m) * m


def _label_embed_kernel(x_ref, w1_ref, b1_ref, w2_ref, b2_ref, o_ref):
    # x_ref:  (TB, pack*D_in)         w1_ref: (pack*D_in,  pack*H)
    # b1_ref: (1, pack*H)             w2_ref: (pack*H,     pack*D_out_pad)
    # b2_ref: (1, pack*D_out_pad)     o_ref:  (TB, pack*D_out_pad)  (multiple of 128 lanes)
    x = x_ref[...]
    h = jnp.dot(x, w1_ref[...], preferred_element_type=jnp.float32) + b1_ref[...]
    h = jnp.maximum(h, 0.0)  # ReLU
    y = jnp.dot(h, w2_ref[...], preferred_element_type=jnp.float32) + b2_ref[...]
    o_ref[...] = y.astype(o_ref.dtype)


def _pack_for(dout):
    """Choose (pack, dout_pad): pack batch rows per slab row so that
    pack * dout_pad is a multiple of 128 (lane-dense, unmasked stores)."""
    if dout % 128 == 0:
        return 1, dout
    pack = 128 // math.gcd(dout, 128)
    if pack <= 8:
        return pack, dout
    # Awkward embed_dim: pad columns to a multiple of 16 -> gcd >= 16 -> pack <= 8.
    dout_pad = _round_up(dout, 16)
    if dout_pad % 128 == 0:
        return 1, dout_pad
    return 128 // math.gcd(dout_pad, 128), dout_pad


def make_label_embedding(w1, b1, w2, b2, *,
                         rows_per_tile=32768,
                         out_dtype=None,
                         per_buffer_budget_bytes=10 * 1024 * 1024,
                         vmem_limit_bytes=48 * 1024 * 1024):
    """Build a fused forward fn: labels -> relu(labels @ w1 + b1) @ w2 + b2.

    Packed (block-diagonal) weights are precomputed once here, off the
    per-call critical path.  The returned function is jitted.
    """
    din, hid = w1.shape
    dout = w2.shape[1]
    pack, dout_pad = _pack_for(dout)

    # --- precompute lane-dense packed weights once (outside the per-call path).
    if dout_pad != dout:
        w2p = jnp.pad(w2, ((0, 0), (0, dout_pad - dout)))
        b2p = jnp.pad(b2, ((0, dout_pad - dout),))
    else:
        w2p, b2p = w2, b2
    eye = jnp.eye(pack, dtype=w1.dtype)
    w1s = jnp.kron(eye, w1)                        # (pack*din, pack*hid)
    w2s = jnp.kron(eye.astype(w2p.dtype), w2p)     # (pack*hid, pack*dout_pad)
    b1s = jnp.tile(b1, pack).reshape(1, -1)        # (1, pack*hid)
    b2s = jnp.tile(b2p, pack).reshape(1, -1)       # (1, pack*dout_pad)

    def fwd(labels):
        B, d_in = labels.shape
        assert d_in == din, f"expected input_dim={din}, got {d_in}"
        odt = labels.dtype if out_dtype is None else jnp.dtype(out_dtype)
        out_isz = jnp.dtype(odt).itemsize
        in_isz = jnp.dtype(labels.dtype).itemsize

        bs = _cdiv(B, pack)                        # slab rows needed

        # --- tile size: big enough to amortize the ~0.35 us/step overhead,
        # small enough that (x block + out block) per buffer fits the budget
        # (x block is lane-padded to >=128 lanes in VMEM).
        bytes_per_slab_row = (pack * dout_pad * out_isz
                              + _round_up(pack * din, 128) * in_isz)
        cap_vmem = max(8, per_buffer_budget_bytes // bytes_per_slab_row)
        cap_rows = max(8, rows_per_tile // pack)
        tbs = min(cap_rows, cap_vmem, _round_up(bs, 8))
        if bs > 8:
            # Keep >=2 grid steps so the parallel axis splits over v7x's 2 TCs.
            tbs = min(tbs, _round_up(_cdiv(bs, 2), 8))
        tbs = max(8, _round_up(tbs, 8))            # sublane-aligned
        grid_b = _cdiv(bs, tbs)
        b_pad = grid_b * tbs * pack                # padded batch rows

        x = labels
        if b_pad != B:
            x = jnp.pad(x, ((0, b_pad - B), (0, 0)))
        # Row-major reshape (B_pad, din) -> (B_pad/pack, pack*din): layout-identical.
        x_slab = x.reshape(b_pad // pack, pack * din)

        out_slab = pl.pallas_call(
            _label_embed_kernel,
            out_shape=jax.ShapeDtypeStruct((b_pad // pack, pack * dout_pad), odt),
            grid=(grid_b,),
            in_specs=[
                pl.BlockSpec((tbs, pack * din), lambda i: (i, 0)),  # streamed batch
                pl.BlockSpec(w1s.shape, lambda i: (0, 0)),          # VMEM-resident
                pl.BlockSpec(b1s.shape, lambda i: (0, 0)),
                pl.BlockSpec(w2s.shape, lambda i: (0, 0)),
                pl.BlockSpec(b2s.shape, lambda i: (0, 0)),
            ],
            out_specs=pl.BlockSpec((tbs, pack * dout_pad), lambda i: (i, 0)),
            compiler_params=pltpu.CompilerParams(
                dimension_semantics=("parallel",),   # batch tiles shard on v7x's 2 TCs
                vmem_limit_bytes=vmem_limit_bytes,   # fits v7x 64 MiB w/ headroom
            ),
        )(x_slab, w1s, b1s, w2s, b2s)

        # Undo slab packing (layout-identical reshape); slice only if padded.
        out = out_slab.reshape(b_pad, dout_pad)
        if dout_pad != dout:
            out = out[:, :dout]
        if b_pad != B:
            out = out[:B]
        return out

    return jax.jit(fwd)


def label_embedding(labels, w1, b1, w2, b2, **kwargs):
    """One-shot convenience wrapper (rebuilds packed weights each call;
    prefer make_label_embedding() when weights are reused)."""
    return make_label_embedding(w1, b1, w2, b2, **kwargs)(labels)


def _reference(labels, w1, b1, w2, b2):
    h = jnp.maximum(labels @ w1 + b1, 0.0)
    return h @ w2 + b2


if __name__ == "__main__":
    key = jax.random.PRNGKey(0)
    k_x, k_w1, k_b1, k_w2, k_b2, k_w2b, k_b2b = jax.random.split(key, 7)

    batch = 8
    input_dim = 4
    hidden = 16
    embed_dim = 32

    labels = jax.random.normal(k_x, (batch, input_dim), dtype=jnp.float32)
    # Deterministic parameter init (roughly matching nn.Linear's uniform init scale).
    w1 = jax.random.uniform(k_w1, (input_dim, hidden), jnp.float32,
                            -1.0 / input_dim ** 0.5, 1.0 / input_dim ** 0.5)
    b1 = jax.random.uniform(k_b1, (hidden,), jnp.float32,
                            -1.0 / input_dim ** 0.5, 1.0 / input_dim ** 0.5)
    w2 = jax.random.uniform(k_w2, (hidden, embed_dim), jnp.float32,
                            -1.0 / hidden ** 0.5, 1.0 / hidden ** 0.5)
    b2 = jax.random.uniform(k_b2, (embed_dim,), jnp.float32,
                            -1.0 / hidden ** 0.5, 1.0 / hidden ** 0.5)

    # Packed weights built once; closure reused across calls (review: hoist kron).
    embed_fn = make_label_embedding(w1, b1, w2, b2)

    out = jax.block_until_ready(embed_fn(labels))
    ref = _reference(labels, w1, b1, w2, b2)
    assert out.shape == (batch, embed_dim)
    assert jnp.allclose(out, ref, atol=1e-5, rtol=1e-5), "mismatch vs reference"

    # Ragged-batch path (B not a multiple of pack/tile): padded + sliced.
    labels2 = jax.random.normal(k_x, (6, input_dim), dtype=jnp.float32)
    out2 = jax.block_until_ready(embed_fn(labels2))
    ref2 = _reference(labels2, w1, b1, w2, b2)
    assert out2.shape == (6, embed_dim)
    assert jnp.allclose(out2, ref2, atol=1e-5, rtol=1e-5), "mismatch (ragged batch)"

    # Awkward embed_dim path (pack>8 fallback -> column padding, still lane-dense).
    embed_dim_odd = 20
    w2b = jax.random.uniform(k_w2b, (hidden, embed_dim_odd), jnp.float32,
                             -1.0 / hidden ** 0.5, 1.0 / hidden ** 0.5)
    b2b = jax.random.uniform(k_b2b, (embed_dim_odd,), jnp.float32,
                             -1.0 / hidden ** 0.5, 1.0 / hidden ** 0.5)
    embed_fn_odd = make_label_embedding(w1, b1, w2b, b2b)
    out3 = jax.block_until_ready(embed_fn_odd(labels))
    ref3 = _reference(labels, w1, b1, w2b, b2b)
    assert out3.shape == (batch, embed_dim_odd)
    assert jnp.allclose(out3, ref3, atol=1e-5, rtol=1e-5), "mismatch (odd embed_dim)"

    print("KERNEL_OK")
</pallas_src>

<mosaic_0001>
module attributes {stable_mosaic.version = 11 : i64} {
  func.func @_label_embed_kernel(%arg0: i32, %arg1: memref<8x16xf32, #tpu.memory_space<vmem>>, %arg2: memref<16x64xf32, #tpu.memory_space<vmem>>, %arg3: memref<1x64xf32, #tpu.memory_space<vmem>>, %arg4: memref<64x128xf32, #tpu.memory_space<vmem>>, %arg5: memref<1x128xf32, #tpu.memory_space<vmem>>, %arg6: memref<8x128xf32, #tpu.memory_space<vmem>>) attributes {dimension_semantics = [#tpu.dimension_semantics<parallel>], iteration_bounds = array<i64: 1>, scalar_prefetch = 0 : i64, scratch_operands = 0 : i64, tpu.core_type = #tpu.core_type<tc>, window_params = [{transform_indices = @transform_0, window_bounds = array<i64: 8, 16>}, {pipeline_mode = #tpu.pipeline_mode<synchronous>, transform_indices = @transform_1, window_bounds = array<i64: 16, 64>}, {pipeline_mode = #tpu.pipeline_mode<synchronous>, transform_indices = @transform_2, window_bounds = array<i64: 1, 64>}, {pipeline_mode = #tpu.pipeline_mode<synchronous>, transform_indices = @transform_3, window_bounds = array<i64: 64, 128>}, {pipeline_mode = #tpu.pipeline_mode<synchronous>, transform_indices = @transform_4, window_bounds = array<i64: 1, 128>}, {transform_indices = @transform_5, window_bounds = array<i64: 8, 128>}]} {
    %c0 = arith.constant 0 : index
    %c0_0 = arith.constant 0 : index
    %0 = vector.load %arg1[%c0, %c0_0] : memref<8x16xf32, #tpu.memory_space<vmem>>, vector<8x16xf32>
    %c0_1 = arith.constant 0 : index
    %c0_2 = arith.constant 0 : index
    %1 = vector.load %arg2[%c0_1, %c0_2] : memref<16x64xf32, #tpu.memory_space<vmem>>, vector<16x64xf32>
    %cst = arith.constant dense<0.000000e+00> : vector<8x64xf32>
    %2 = tpu.matmul %0, %1, %cst {dimension_numbers = #tpu.dot_dimension_numbers<[1], [0], [0], [1], [0, 0, 1, 1], [], []>} : vector<8x16xf32>, vector<16x64xf32>, vector<8x64xf32> -> vector<8x64xf32>
    %c0_3 = arith.constant 0 : index
    %c0_4 = arith.constant 0 : index
    %3 = vector.load %arg3[%c0_3, %c0_4] : memref<1x64xf32, #tpu.memory_space<vmem>>, vector<1x64xf32>
    %4 = vector.broadcast %3 : vector<1x64xf32> to vector<8x64xf32>
    %5 = arith.addf %2, %4 : vector<8x64xf32>
    %cst_5 = arith.constant 0.000000e+00 : f32
    %6 = vector.broadcast %cst_5 : f32 to vector<8x64xf32>
    %7 = arith.maximumf %5, %6 : vector<8x64xf32>
    %c0_6 = arith.constant 0 : index
    %c0_7 = arith.constant 0 : index
    %8 = vector.load %arg4[%c0_6, %c0_7] : memref<64x128xf32, #tpu.memory_space<vmem>>, vector<64x128xf32>
    %cst_8 = arith.constant dense<0.000000e+00> : vector<8x128xf32>
    %9 = tpu.matmul %7, %8, %cst_8 {dimension_numbers = #tpu.dot_dimension_numbers<[1], [0], [0], [1], [0, 0, 1, 1], [], []>} : vector<8x64xf32>, vector<64x128xf32>, vector<8x128xf32> -> vector<8x128xf32>
    %c0_9 = arith.constant 0 : index
    %c0_10 = arith.constant 0 : index
    %10 = vector.load %arg5[%c0_9, %c0_10] : memref<1x128xf32, #tpu.memory_space<vmem>>, vector<1x128xf32>
    %11 = vector.broadcast %10 : vector<1x128xf32> to vector<8x128xf32>
    %12 = arith.addf %9, %11 : vector<8x128xf32>
    %c0_11 = arith.constant 0 : index
    %c0_12 = arith.constant 0 : index
    %13 = vector.load %arg6[%c0_11, %c0_12] : memref<8x128xf32, #tpu.memory_space<vmem>>, vector<8x128xf32>
    tpu.vector_store %arg6[%c0_11, %c0_12], %12 {strides = array<i32>} : memref<8x128xf32, #tpu.memory_space<vmem>>, vector<8x128xf32>,
    return
  }
  func.func @transform_0(%arg0: i32) -> (i32, i32) {
    %c0_i32 = arith.constant 0 : i32
    %c0_i32_0 = arith.constant 0 : i32
    return %arg0, %c0_i32 : i32, i32
  }
  func.func @transform_1(%arg0: i32) -> (i32, i32) {
    %c0_i32 = arith.constant 0 : i32
    %c0_i32_0 = arith.constant 0 : i32
    %c0_i32_1 = arith.constant 0 : i32
    return %c0_i32, %c0_i32_0 : i32, i32
  }
  func.func @transform_2(%arg0: i32) -> (i32, i32) {
    %c0_i32 = arith.constant 0 : i32
    %c0_i32_0 = arith.constant 0 : i32
    %c0_i32_1 = arith.constant 0 : i32
    return %c0_i32, %c0_i32_0 : i32, i32
  }
  func.func @transform_3(%arg0: i32) -> (i32, i32) {
    %c0_i32 = arith.constant 0 : i32
    %c0_i32_0 = arith.constant 0 : i32
    %c0_i32_1 = arith.constant 0 : i32
    return %c0_i32, %c0_i32_0 : i32, i32
  }
  func.func @transform_4(%arg0: i32) -> (i32, i32) {
    %c0_i32 = arith.constant 0 : i32
    %c0_i32_0 = arith.constant 0 : i32
    %c0_i32_1 = arith.constant 0 : i32
    return %c0_i32, %c0_i32_0 : i32, i32
  }
  func.func @transform_5(%arg0: i32) -> (i32, i32) {
    %c0_i32 = arith.constant 0 : i32
    %c0_i32_0 = arith.constant 0 : i32
    return %arg0, %c0_i32 : i32, i32
  }
}

</mosaic_0001>

<bundles_post_ra>
// kernel: fwd.1
= control target key start
LH: loop header
LB: loop body
LE: loop exit
PB: predicated region body
PF: predicated region fallthrough
CT: control target
= control target key end

     0   :  { %v243_v0 = vmov 0.0   ;;  %vm244_vm0 = vmmov 0   ;;  %vm30_vm1 = vcmask 130048   ;;  %vm120_vm2 = vcmask 523264   ;;  %s319_s1 = inlined_call_operand.vmem [shape: f32[16,64], index: 1, kind: input, shape index: {}]   ;;  %s320_s0 = inlined_call_operand.vmem [shape: f32[8,16], index: 0, kind: input, shape index: {}]   ;;  %s321_s3 = inlined_call_operand.vmem [shape: f32[64,128], index: 3, kind: input, shape index: {}]   ;;  %s322_s2 = inlined_call_operand.vmem [shape: f32[1,64], index: 2, kind: input, shape index: {}]   ;;  %s323_s4 = inlined_call_operand.vmem [shape: f32[1,128], index: 4, kind: input, shape index: {}]   ;;  %s324_s5 = inlined_call_operand.vmem [shape: f32[8,128], index: 5, kind: output, shape index: {}]  }
   0x1   :  { %215 = vmatprep.subr.mxu0 %v243_v0  ;;  %v22_v1 = vld [vmem:[%s319_s1 + $0x8] sm:$0xff]  ;;  %v21_v2 = vld [vmem:[%s319_s1] sm:$0xff]  ;;  %219 = vmatprep.mubr.msk.f32.mxu0 %vm244_vm0, %v243_v0  ;;  %v112_v4 = vld [vmem:[%s321_s3 + $0x38] sm:$0xff] }
   0x2   :  { %216 = vmatpush3.msra.mxu0 %v22_v1  ;;  %v20_v3 = vld [vmem:[%s320_s0] sm:$0xff]  ;;  %222 = vmatprep.subr.mxu1 %v243_v0  ;;  %v111_v5 = vld [vmem:[%s321_s3 + $0x30] sm:$0xff]  ;;  %v110_v6 = vld [vmem:[%s321_s3 + $0x28] sm:$0xff] }
   0x3   :  { %217 = vmatprep.subr.mxu0 %v243_v0  ;;  %223 = vmatpush3.msra.mxu1 %v112_v4  ;;  %v109_v7 = vld [vmem:[%s321_s3 + $0x20] sm:$0xff]  ;;  %v108_v8 = vld [vmem:[%s321_s3 + $0x18] sm:$0xff]  ;;  %v107_v9 = vld [vmem:[%s321_s3 + $0x10] sm:$0xff] }
   0x4   :  { %218 = vmatpush3.msra.mxu0 %v21_v2  ;;  %224 = vmatprep.subr.mxu1 %v243_v0  ;;  %v106_v10 = vld [vmem:[%s321_s3 + $0x8] sm:$0xff]  ;;  %v105_v11 = vld [vmem:[%s321_s3] sm:$0xff] }
   0x5   :  { %220 = vmatmul.mubr.msk.f32.vlgmr.msra.gmra.mxu0 %vm30_vm1, %v20_v3  ;;  %225 = vmatpush3.msra.mxu1 %v111_v5  ;;  %v199_v12 = vld [vmem:[%s322_s2] ss:$0 sm:$0xff] }
   0x6   :  { %226 = vmatprep.subr.mxu1 %v243_v0  ;;  %238 = vmatprep.mubr.msk.f32.mxu1 %vm244_vm0, %v243_v0  ;;  %v201_v17 = vld [vmem:[%s323_s4] ss:$0 sm:$0xff] }
   0x7   :  { %227 = vmatpush3.msra.mxu1 %v110_v6 }
   0x8   :  { %228 = vmatprep.subr.mxu1 %v243_v0 }
   0x9   :  { %229 = vmatpush3.msra.mxu1 %v109_v7 }
   0xa   :  { %230 = vmatprep.subr.mxu1 %v243_v0 }
   0xb   :  { %231 = vmatpush3.msra.mxu1 %v108_v8 }
   0xc   :  { %232 = vmatprep.subr.mxu1 %v243_v0 }
   0xd   :  { %233 = vmatpush3.msra.mxu1 %v107_v9 }
   0xe   :  { %234 = vmatprep.subr.mxu1 %v243_v0 }
   0xf   :  { %235 = vmatpush3.msra.mxu1 %v106_v10 }
  0x10   :  { %236 = vmatprep.subr.mxu1 %v243_v0 }
  0x11   :  { %237 = vmatpush3.msra.mxu1 %v105_v11 }
  0xc5   :  { %v100_v13 = vpop.f32.mrf.mxu0 }
  0xc6   :  { %v101_v14 = vadd.f32 %v199_v12, %v100_v13 }
  0xc7   :  { %v221_v15 = vpop.f32.mrf.mxu0 }
  0xc8   :  { %v104_v16 = vmax.f32 %v101_v14, 0.0 }
  0xca   :  { %239 = vmatmul.mubr.msk.f32.vlgmr.msra.gmra.mxu1 %vm120_vm2, %v104_v16 }
 0x18a   :  { %v190_v18 = vpop.f32.mrf.mxu1 }
 0x18b   :  { %v191_v19 = vadd.f32 %v201_v17, %v190_v18 }
 0x18c   :  { %v240_v20 = vpop.f32.mrf.mxu1 }
 0x18d   :  { %194 = vst [vmem:[%s324_s5] sm:$0xff] %v191_v19 }

</bundles_post_ra>
